<compile_context>
chip_gen: v7x
topology: tpu7x:2x2x1
jax: 0.10.0
libtpu: 0.0.40
codegen_flags: <defaults>
</compile_context>

<pallas_src>
import functools

import jax
import jax.numpy as jnp
from jax import lax
from jax.experimental import pallas as pl
from jax.experimental.pallas import tpu as pltpu

_LANE = 128
_SUBLANE = 8
_MAX_BLOCK_ROWS = 2048   # 2048 x 128 f32 = 1 MiB per pipeline buffer


def _splitmix32(x):
    """SplitMix32-style finalizer: uniform u32 hash of a u32 input."""
    x = x ^ (x >> 16)
    x = x * jnp.uint32(0x7FEB352D)
    x = x ^ (x >> 15)
    x = x * jnp.uint32(0x846CA68B)
    x = x ^ (x >> 16)
    return x


def _dropout_kernel(seed_ref, x_ref, o_ref, *, threshold, scale, block_rows):
    # Global flat element index of every element of this tile, as uint32.
    row = lax.broadcasted_iota(jnp.int32, (block_rows, _LANE), 0).astype(jnp.uint32)
    lane = lax.broadcasted_iota(jnp.int32, (block_rows, _LANE), 1).astype(jnp.uint32)
    base_row = (pl.program_id(0) * block_rows).astype(jnp.uint32)
    idx = (base_row + row) * jnp.uint32(_LANE) + lane

    # Counter-based RNG: hash (mixed seed) xor (index) -> uniform 32-bit draw.
    # Multiplicative seed mixing keeps nearby seeds on uncorrelated streams.
    seed_u = seed_ref[0].astype(jnp.uint32)
    bits = _splitmix32(idx ^ _splitmix32(seed_u * jnp.uint32(0x9E3779B9)))

    # keep  <=>  uniform > p  <=>  bits > floor(p * 2^32)   (integer compare)
    keep = bits > jnp.uint32(threshold)
    x = x_ref[...]
    o_ref[...] = jnp.where(keep, x * jnp.asarray(scale, x.dtype),
                           jnp.zeros_like(x))


def my_standard_dropout(x, seed, p=0.2, training=True):
    """JAX/Pallas equivalent of MyStandardDropout.forward."""
    if not training:
        return x
    scale = (1.0 / (1.0 - p)) if p < 1 else 0.0
    threshold = min(int(p * (1 << 32)), (1 << 32) - 1) if p > 0 else 0

    orig_shape = x.shape
    n = x.size
    xf = x.reshape(-1)

    # Pad only if needed so rows is a multiple of the 8-sublane vreg height.
    tile_elems = _LANE * _SUBLANE
    pad = (-n) % tile_elems
    if pad:
        xf = jnp.pad(xf, (0, pad))
    rows = xf.shape[0] // _LANE
    x2 = xf.reshape(rows, _LANE)

    block_rows = min(_MAX_BLOCK_ROWS, rows)   # multiple of 8 by construction
    grid = (pl.cdiv(rows, block_rows),)

    seed_arr = jnp.asarray([seed], jnp.int32)

    out2 = pl.pallas_call(
        functools.partial(_dropout_kernel, threshold=threshold, scale=scale,
                          block_rows=block_rows),
        out_shape=jax.ShapeDtypeStruct((rows, _LANE), x2.dtype),
        grid_spec=pltpu.PrefetchScalarGridSpec(
            num_scalar_prefetch=1,
            grid=grid,
            in_specs=[pl.BlockSpec((block_rows, _LANE),
                                   lambda i, seed: (i, 0))],
            out_specs=pl.BlockSpec((block_rows, _LANE),
                                   lambda i, seed: (i, 0)),
        ),
        compiler_params=pltpu.CompilerParams(
            dimension_semantics=("parallel",)),
    )(seed_arr, x2)

    outf = out2.reshape(-1)
    if pad:
        outf = outf[:n]
    return outf.reshape(orig_shape)


if __name__ == "__main__":
    P = 0.2
    key = jax.random.PRNGKey(0)
    x = jax.random.normal(key, (2, 4, 16, 16), dtype=jnp.float32)

    out = my_standard_dropout(x, seed=0, p=P, training=True)
    out = jax.block_until_ready(out)

    # Sanity checks: shape/dtype preserved, every output element is either 0
    # (dropped) or input * 1/(1-p) (kept & rescaled).
    assert out.shape == x.shape and out.dtype == x.dtype
    scale = 1.0 / (1.0 - P)
    kept = jnp.abs(out - x * scale) < 1e-5
    dropped = jnp.abs(out) < 1e-7
    assert bool(jnp.all(kept | dropped))
    # Drop rate should be roughly p (loose statistical bound on 2048 elems).
    drop_frac = float(jnp.mean(dropped.astype(jnp.float32)))
    assert 0.05 < drop_frac < 0.40, drop_frac

    # Different seeds give different masks.
    out2 = jax.block_until_ready(my_standard_dropout(x, seed=1, p=P, training=True))
    assert not bool(jnp.all(out2 == out))

    # Eval mode: identity.
    out_eval = jax.block_until_ready(
        my_standard_dropout(x, seed=0, p=P, training=False))
    assert bool(jnp.all(out_eval == x))

    print("KERNEL_OK")
</pallas_src>

<mosaic_0001>
module attributes {stable_mosaic.version = 11 : i64} {
  func.func @_dropout_kernel(%arg0: i32, %arg1: memref<1xi32, #tpu.memory_space<smem>>, %arg2: memref<16x128xf32, #tpu.memory_space<vmem>>, %arg3: memref<16x128xf32, #tpu.memory_space<vmem>>) attributes {dimension_semantics = [#tpu.dimension_semantics<parallel>], iteration_bounds = array<i64: 1>, scalar_prefetch = 1 : i64, scratch_operands = 0 : i64, tpu.core_type = #tpu.core_type<tc>, window_params = [{transform_indices = @transform_0, window_bounds = array<i64: 16, 128>}, {transform_indices = @transform_1, window_bounds = array<i64: 16, 128>}]} {
    %0 = tpu.iota {dimensions = array<i32: 0>} : vector<16x128xi32>
    %1 = tpu.iota {dimensions = array<i32: 1>} : vector<16x128xi32>
    %c16_i32 = arith.constant 16 : i32
    %2 = arith.muli %arg0, %c16_i32 : i32
    %3 = vector.broadcast %2 : i32 to vector<16x128xi32>
    %4 = arith.addi %3, %0 : vector<16x128xi32>
    %c128_i32 = arith.constant 128 : i32
    %5 = vector.broadcast %c128_i32 : i32 to vector<16x128xi32>
    %6 = arith.muli %4, %5 : vector<16x128xi32>
    %7 = arith.addi %6, %1 : vector<16x128xi32>
    %c0 = arith.constant 0 : index
    %8 = memref.load %arg1[%c0] : memref<1xi32, #tpu.memory_space<smem>>
    %c-1640531527_i32 = arith.constant -1640531527 : i32
    %9 = arith.muli %8, %c-1640531527_i32 : i32
    %c16_i32_0 = arith.constant 16 : i32
    %10 = arith.shrui %9, %c16_i32_0 : i32
    %11 = arith.xori %9, %10 : i32
    %c2146121005_i32 = arith.constant 2146121005 : i32
    %12 = arith.muli %11, %c2146121005_i32 : i32
    %c15_i32 = arith.constant 15 : i32
    %13 = arith.shrui %12, %c15_i32 : i32
    %14 = arith.xori %12, %13 : i32
    %c-2073254261_i32 = arith.constant -2073254261 : i32
    %15 = arith.muli %14, %c-2073254261_i32 : i32
    %c16_i32_1 = arith.constant 16 : i32
    %16 = arith.shrui %15, %c16_i32_1 : i32
    %17 = arith.xori %15, %16 : i32
    %18 = vector.broadcast %17 : i32 to vector<16x128xi32>
    %19 = arith.xori %7, %18 : vector<16x128xi32>
    %c16_i32_2 = arith.constant 16 : i32
    %20 = vector.broadcast %c16_i32_2 : i32 to vector<16x128xi32>
    %21 = arith.shrui %19, %20 : vector<16x128xi32>
    %22 = arith.xori %19, %21 : vector<16x128xi32>
    %c2146121005_i32_3 = arith.constant 2146121005 : i32
    %23 = vector.broadcast %c2146121005_i32_3 : i32 to vector<16x128xi32>
    %24 = arith.muli %22, %23 : vector<16x128xi32>
    %c15_i32_4 = arith.constant 15 : i32
    %25 = vector.broadcast %c15_i32_4 : i32 to vector<16x128xi32>
    %26 = arith.shrui %24, %25 : vector<16x128xi32>
    %27 = arith.xori %24, %26 : vector<16x128xi32>
    %c-2073254261_i32_5 = arith.constant -2073254261 : i32
    %28 = vector.broadcast %c-2073254261_i32_5 : i32 to vector<16x128xi32>
    %29 = arith.muli %27, %28 : vector<16x128xi32>
    %c16_i32_6 = arith.constant 16 : i32
    %30 = vector.broadcast %c16_i32_6 : i32 to vector<16x128xi32>
    %31 = arith.shrui %29, %30 : vector<16x128xi32>
    %32 = arith.xori %29, %31 : vector<16x128xi32>
    %c858993459_i32 = arith.constant 858993459 : i32
    %33 = vector.broadcast %c858993459_i32 : i32 to vector<16x128xi32>
    %34 = arith.cmpi ugt, %32, %33 : vector<16x128xi32>
    %c0_7 = arith.constant 0 : index
    %c0_8 = arith.constant 0 : index
    %35 = vector.load %arg2[%c0_7, %c0_8] : memref<16x128xf32, #tpu.memory_space<vmem>>, vector<16x128xf32>
    %cst = arith.constant 1.250000e+00 : f32
    %36 = vector.broadcast %cst : f32 to vector<16x128xf32>
    %37 = arith.mulf %35, %36 : vector<16x128xf32>
    %cst_9 = arith.constant 0.000000e+00 : f32
    %38 = vector.broadcast %cst_9 : f32 to vector<16x128xf32>
    %39 = arith.select %34, %37, %38 : vector<16x128xi1>, vector<16x128xf32>
    %c0_10 = arith.constant 0 : index
    %c0_11 = arith.constant 0 : index
    %40 = vector.load %arg3[%c0_10, %c0_11] : memref<16x128xf32, #tpu.memory_space<vmem>>, vector<16x128xf32>
    tpu.vector_store %arg3[%c0_10, %c0_11], %39 {strides = array<i32>} : memref<16x128xf32, #tpu.memory_space<vmem>>, vector<16x128xf32>,
    return
  }
  func.func @transform_0(%arg0: i32, %arg1: memref<1xi32, #tpu.memory_space<smem>>) -> (i32, i32) {
    %c0_i32 = arith.constant 0 : i32
    %c0_i32_0 = arith.constant 0 : i32
    return %arg0, %c0_i32 : i32, i32
  }
  func.func @transform_1(%arg0: i32, %arg1: memref<1xi32, #tpu.memory_space<smem>>) -> (i32, i32) {
    %c0_i32 = arith.constant 0 : i32
    %c0_i32_0 = arith.constant 0 : i32
    return %arg0, %c0_i32 : i32, i32
  }
}

</mosaic_0001>

<bundles_post_ra>
// kernel: tpu_custom_call.1
= control target key start
LH: loop header
LB: loop body
LE: loop exit
PB: predicated region body
PF: predicated region fallthrough
CT: control target
= control target key end

     0   :  { %8 = vsyncpa [#allocation5], 0  ;;  %s198_s0 = inlined_call_operand.<no memory space> [shape: s32[1], index: 0, kind: input, shape index: {}]   ;;  %s199_s1 = inlined_call_operand.hbm [shape: f32[16,128], index: 1, kind: input, shape index: {}]   ;;  %s200_s2 = inlined_call_operand.hbm [shape: f32[16,128], index: 2, kind: output, shape index: {}]  }
   0x1   :  { %9 = vsyncpa [#allocation6], 0  ;;  %s146_s9 = smov [#allocation4]   ;;  %s98_s13 = scalar_lea.hbm %s199_s1, 256 }
   0x2   :  { %s15_s10 = sshll.u32 %s146_s9, 4  ;;  %p99_p0 = scmp.ne.s32.totalorder %s199_s1, %s98_s13  ;;  %s16_s10 = int_to_ptr.vmem [resolvable:$true] %s15_s10 }
   0x3   :  { %p102_p1 = scmp.lt.u32.totalorder %s98_s13, %s199_s1 }
   0x5   :  { %p104_p2 = pnand %p102_p1, %p99_p0 }
   0x7   :  { %107 = shalt.err (!%p104_p2)
}
   0x8   :  { %s108_s18 = scalar_lea.vmem %s16_s10, 256  ;;  %p113_p4 = scmp.lt.s32.totalorder %s16_s10, %s16_s10 }
   0x9   :  { %p109_p3 = scmp.ne.s32.totalorder %s16_s10, %s108_s18  ;;  %p114_p5 = scmp.lt.s32.totalorder %s108_s18, %s108_s18 }
   0xb   :  { %p115_p6 = por %p114_p5, %p113_p4 }
   0xd   :  { %p116_p7 = pnand %p115_p6, %p109_p3 }
   0xf   :  { %119 = shalt.err (!%p116_p7)
}
  0x10   :  { %s147_s19 = smov 128   ;;  %s148_s20 = smov 8  }
  0x11   :  { %21 = dma.hbm_to_vmem [thread:$0]  %s199_s1, 256, %s16_s10, [#allocation5], %s147_s19, %s147_s19, %s148_s20  }
  0x12   :  { %142 = dma.done.wait [#allocation5], 256  }
  0x13   :  { %143 = vsyncadd [#allocation5], 4294967040  ;;  %v25_v0 = vlaneseq  ;;  %s39_s25 = smul.u32 2654435769, %s198_s0  ;;  %v69_v22 = vld [vmem:[#allocation4] sm:$0xff]  ;;  %v70_v24 = vld [vmem:[#allocation4 + $0x8] sm:$0xff] }
  0x14   :  { %v71_v27 = vmul.f32 1.25, %v69_v22  ;;  %v72_v28 = vmul.f32 1.25, %v70_v24  ;;  %s149_s0 = smov [#allocation7]  }
  0x15   :  { %v26_v1 = vshrl.u32 %v25_v0, 7  ;;  %s40_s26 = sshrl.u32 %s39_s25, 16  ;;  %v29_v3 = vand.u32 127, %v25_v0  ;;  %s82_s5 = sshll.u32 %s149_s0, 4  ;;  %s83_s5 = int_to_ptr.vmem [resolvable:$true] %s82_s5 }
  0x16   :  { %s41_s27 = sxor.u32 %s40_s26, %s39_s25  ;;  %s120_s6 = scalar_lea.vmem %s83_s5, 256 }
  0x17   :  { %s42_s28 = smul.u32 2146121005, %s41_s27  ;;  %v27_v2 = vadd.s32 8, %v26_v1  ;;  %v34_v4 = vmul.u32 128, %v26_v1  ;;  %p121_p8 = scmp.ne.s32.totalorder %s83_s5, %s120_s6 }
  0x18   :  { %p125_p9 = scmp.lt.s32.totalorder %s83_s5, %s83_s5  ;;  %p126_p10 = scmp.lt.s32.totalorder %s120_s6, %s120_s6 }
  0x19   :  { %s43_s29 = sshrl.u32 %s42_s28, 15  ;;  %v35_v5 = vmul.u32 128, %v27_v2  ;;  %v36_v6 = vadd.s32 %v34_v4, %v29_v3 }
  0x1a   :  { %s44_s30 = sxor.u32 %s43_s29, %s42_s28  ;;  %p127_p11 = por %p126_p10, %p125_p9 }
  0x1b   :  { %s45_s3 = smul.u32 2221713035, %s44_s30  ;;  %v37_v7 = vadd.s32 %v35_v5, %v29_v3 }
  0x1c   :  { %p128_p12 = pnand %p127_p11, %p121_p8 }
  0x1d   :  { %s46_s1 = sshrl.u32 %s45_s3, 16 }
  0x1e   :  { %s47_s4 = sxor.u32 %s46_s1, %s45_s3 }
  0x1f   :  { %v48_v8 = vstv %s47_s4 }
  0x20   :  { %v49_v9 = vxor.u32 %v48_v8, %v36_v6  ;;  %v50_v10 = vxor.u32 %v48_v8, %v37_v7 }
  0x22   :  { %v51_v11 = vshrl.u32 %v49_v9, 16  ;;  %v52_v12 = vshrl.u32 %v50_v10, 16 }
  0x24   :  { %v53_v13 = vxor.u32 %v51_v11, %v49_v9  ;;  %v54_v14 = vxor.u32 %v52_v12, %v50_v10 }
  0x26   :  { %v55_v15 = vmul.u32 2146121005, %v53_v13  ;;  %v56_v16 = vmul.u32 2146121005, %v54_v14 }
  0x28   :  { %v57_v17 = vshrl.u32 %v55_v15, 15  ;;  %v58_v18 = vshrl.u32 %v56_v16, 15 }
  0x2a   :  { %v59_v19 = vxor.u32 %v57_v17, %v55_v15  ;;  %v60_v20 = vxor.u32 %v58_v18, %v56_v16 }
  0x2c   :  { %v61_v21 = vmul.u32 2221713035, %v59_v19  ;;  %v62_v23 = vmul.u32 2221713035, %v60_v20 }
  0x2e   :  { %v63_v25 = vshrl.u32 %v61_v21, 16  ;;  %v64_v26 = vshrl.u32 %v62_v23, 16 }
  0x30   :  { %v65_v29 = vxor.u32 %v63_v25, %v61_v21  ;;  %v66_v30 = vxor.u32 %v64_v26, %v62_v23 }
  0x32   :  { %vm67_vm0 = vcmp.gt.u32.totalorder %v65_v29, 858993459  ;;  %vm68_vm1 = vcmp.gt.u32.totalorder %v66_v30, 858993459 }
  0x33   :  { %v73_v31 = vsel %vm67_vm0, %v71_v27, 0.0  ;;  %v74_v32 = vsel %vm68_vm1, %v72_v28, 0.0 }
  0x34   :  { %75 = vst [vmem:[#allocation7] sm:$0xff] %v73_v31  ;;  %76 = vst [vmem:[#allocation7 + $0x8] sm:$0xff] %v74_v32 }
  0x35   :  { %131 = shalt.err (!%p128_p12)
}
  0x36   :  { %s132_s9 = scalar_lea.hbm %s200_s2, 256 }
  0x37   :  { %p133_p13 = scmp.ne.s32.totalorder %s200_s2, %s132_s9  ;;  %p136_p0 = scmp.lt.u32.totalorder %s132_s9, %s200_s2 }
  0x39   :  { %p138_p1 = pnand %p136_p0, %p133_p13 }
  0x3b   :  { %141 = shalt.err (!%p138_p1)
}
  0x3c   :  { %88 = dma.vmem_to_hbm [thread:$0]  %s83_s5, 256, %s200_s2, [#allocation6], %s147_s19, %s147_s19, %s148_s20  }
  0x3d   :  { %144 = dma.done.wait [#allocation6], 256  }
  0x3e   :  { %145 = vsyncadd [#allocation6], 4294967040 }
  0x3f   :  { %92 = vsyncpa [#allocation5], 1 }
  0x40   :  { %93 = vsyncpa [#allocation6], 1 }

</bundles_post_ra>
